<compile_context>
chip_gen: v7x
topology: tpu7x:2x2x1
jax: 0.10.0
libtpu: 0.0.40
codegen_flags: <defaults>
</compile_context>

<pallas_src>
import math

import jax
import jax.numpy as jnp
from jax.experimental import pallas as pl
from jax.experimental.pallas import tpu as pltpu


def _compute_bias(num_class, alpha, r, m, t):
    """Deterministic bias init exactly as in SphereFace2.__init__ (magn_type='C')."""
    z = alpha / ((1.0 - alpha) * (num_class - 1.0))
    ay = r * (2.0 * 0.5 ** t - 1.0 - m)
    ai = r * (2.0 * 0.5 ** t - 1.0 + m)
    temp = (1.0 - z) ** 2 + 4.0 * z * math.exp(ay - ai)
    return math.log(2.0 * z) - ai - math.log(1.0 - z + math.sqrt(temp))


def _int_pow(u, n):
    """u**n via exponentiation-by-squaring, unrolled at trace time (pure VPU)."""
    result = None
    base = u
    while n > 0:
        if n & 1:
            result = base if result is None else result * base
        n >>= 1
        if n:
            base = base * base
    return result


def _make_kernel(B, b_pad, D, C, tile_c, n_inner, alpha, r, m, t, lw, b_const,
                 mxu_dtype, has_col_pad, has_row_pad):
    ws = lw * C / r                     # uses ORIGINAL C
    c_pos = ws * alpha                  # weight for target columns
    c_neg = ws * (1.0 - alpha)          # weight for non-target columns
    ca = 2.0 * r                        # logits = ca*u^t + cb - cc*one_hot
    cb = r * (m - 1.0) + b_const
    cc = 2.0 * r * m
    inv_bc = 1.0 / (B * C)              # mean over ORIGINAL B*C elements
    t_int = int(t) if (float(t).is_integer() and 1 <= int(t) <= 16) else None
    n_groups = tile_c // 128

    def kernel(x_ref, w_ref, y_ref, loss_ref, xn_ref, acc_ref):
        p = pl.program_id(0)            # core / class-half index (parallel)
        j = pl.program_id(1)            # class tile within this half (arbitrary)

        # ---- first tile on this core: init accumulator, hoist x normalization ----
        @pl.when(j == 0)
        def _():
            acc_ref[...] = jnp.zeros_like(acc_ref)
            x = x_ref[...].astype(jnp.float32)                     # [B, D]
            # F.normalize(x, dim=1): x / max(||x||, 1e-12) == x * rsqrt(max(ss,1e-24))
            inv_nx = jax.lax.rsqrt(
                jnp.maximum(jnp.sum(x * x, axis=1, keepdims=True), 1e-24))
            xn_ref[...] = (x * inv_nx).astype(xn_ref.dtype)        # stored in MXU dtype

        # ---- column norms of this w tile (norm folded into cos, no wn temp) ----
        w32 = w_ref[...].astype(jnp.float32)                       # [D, TILE_C]
        inv_nw = jax.lax.rsqrt(
            jnp.maximum(jnp.sum(w32 * w32, axis=0, keepdims=True), 1e-24))  # [1,TILE_C]

        # cos_theta = (xn @ w_raw) * inv_nw    (MXU + one [B,TILE_C] scale)
        cos = jnp.dot(xn_ref[...], w_ref[...].astype(mxu_dtype),
                      preferred_element_type=jnp.float32) * inv_nw  # [B, TILE_C]

        # global class ids of the lanes in this tile
        tile_base = (p * n_inner + j) * tile_c
        cls = tile_base + jax.lax.broadcasted_iota(jnp.int32, (b_pad, tile_c), 1)
        is_tgt = cls == y_ref[...]                                  # y_ref: [B,1]

        # margin 'C': logits = r*(2*((cos+1)/2)^t - 1 + m) + b - 2*r*m*one_hot
        u = cos * 0.5 + 0.5
        u_t = _int_pow(u, t_int) if t_int is not None else jnp.power(jnp.maximum(u, 0.0), t)
        base = ca * u_t + cb
        logits = jnp.where(is_tgt, base - cc, base)

        # weighted binary_cross_entropy_with_logits (one_hot kept as bool mask)
        bce = (jnp.maximum(logits, 0.0)
               - jnp.where(is_tgt, logits, 0.0)
               + jnp.log1p(jnp.exp(-jnp.abs(logits))))
        per = jnp.where(is_tgt, c_pos, c_neg) * bce
        if has_col_pad:
            per = jnp.where(cls < C, per, 0.0)      # only emitted if C was padded

        # lane-dense vector accumulation (VALU); full XLU reduce only at finalize
        part = per[:, 0:128]
        for g in range(1, n_groups):
            part = part + per[:, g * 128:(g + 1) * 128]
        if has_row_pad:
            row = jax.lax.broadcasted_iota(jnp.int32, (b_pad, 128), 0)
            part = jnp.where(row < B, part, 0.0)    # only emitted if B was padded
        acc_ref[...] += part

        @pl.when(j == n_inner - 1)
        def _():
            loss_ref[...] = (jnp.sum(acc_ref[...]) * inv_bc).reshape(1, 1, 1)

    return kernel


def sphereface2_loss(x, w, y, *, alpha=0.7, r=40.0, m=0.4, t=3.0, lw=50.0,
                     b_const=0.0, tile_c=1024, force_bf16_mxu=False):
    """SphereFace2-C loss.  x: [B, D], w: [D, C], y: [B] int labels."""
    B, D = x.shape
    Dw, C = w.shape
    assert Dw == D
    assert tile_c % 128 == 0, "class tile must be lane-aligned (multiple of 128)"

    # bf16 MXU operands if inputs are bf16 (or explicitly forced, e.g. on v5e);
    # all elementwise math stays f32.
    mxu_dtype = (jnp.bfloat16
                 if (force_bf16_mxu or
                     (x.dtype == jnp.bfloat16 and w.dtype == jnp.bfloat16))
                 else jnp.float32)

    # --- class tiling: lane-aligned pad, split class tiles across 2 cores (v7x) ---
    tile_c = min(tile_c, pl.cdiv(C, 128) * 128)     # don't over-pad tiny class counts
    n_tiles = pl.cdiv(C, tile_c)
    n_cores = 2 if n_tiles >= 2 else 1
    n_inner = pl.cdiv(n_tiles, n_cores)
    c_pad = n_cores * n_inner * tile_c
    if c_pad != C:
        w = jnp.pad(w, ((0, 0), (0, c_pad - C)))    # zero columns, masked in-kernel

    # --- batch padded to the sublane multiple of the MXU operand dtype ---
    sub = 16 if mxu_dtype == jnp.bfloat16 else 8
    b_pad = pl.cdiv(B, sub) * sub
    if b_pad != B:
        x = jnp.pad(x, ((0, b_pad - B), (0, 0)))
        y = jnp.pad(y, (0, b_pad - B), constant_values=-1)
    y2 = y.reshape(b_pad, 1).astype(jnp.int32)

    kernel = _make_kernel(B, b_pad, D, C, tile_c, n_inner, alpha, r, m, t, lw,
                          b_const, mxu_dtype, c_pad != C, b_pad != B)

    # VMEM budget: double-buffered w stream + x + xn scratch + epilogue temps.
    vmem_limit = int(1.5 * (2 * D * tile_c * jnp.dtype(w.dtype).itemsize
                            + 2 * b_pad * D * jnp.dtype(x.dtype).itemsize
                            + b_pad * D * jnp.dtype(mxu_dtype).itemsize
                            + 10 * b_pad * tile_c * 4))
    vmem_limit = max(32 << 20, min(vmem_limit, 64 << 20))

    out = pl.pallas_call(
        kernel,
        out_shape=jax.ShapeDtypeStruct((n_cores, 1, 1), jnp.float32),
        grid=(n_cores, n_inner),
        in_specs=[
            pl.BlockSpec((b_pad, D), lambda p, j: (0, 0)),            # x: resident
            pl.BlockSpec((D, tile_c), lambda p, j: (0, p * n_inner + j)),  # w: streamed
            pl.BlockSpec((b_pad, 1), lambda p, j: (0, 0)),            # labels: resident
        ],
        out_specs=pl.BlockSpec((1, 1, 1), lambda p, j: (p, 0, 0)),    # per-core partial
        scratch_shapes=[
            pltpu.VMEM((b_pad, D), mxu_dtype),      # hoisted normalized x (MXU dtype)
            pltpu.VMEM((b_pad, 128), jnp.float32),  # lane-dense loss accumulator
        ],
        compiler_params=pltpu.CompilerParams(
            dimension_semantics=("parallel", "arbitrary"),
            vmem_limit_bytes=vmem_limit),
    )(x, w, y2)
    return jnp.sum(out)


def sphereface2_loss_ref(x, w, y, *, alpha, r, m, t, lw, b_const):
    """Pure-JAX reference (mirrors the PyTorch forward), full-f32 matmul."""
    C = w.shape[1]
    xn = x / jnp.maximum(jnp.linalg.norm(x, axis=1, keepdims=True), 1e-12)
    wn = w / jnp.maximum(jnp.linalg.norm(w, axis=0, keepdims=True), 1e-12)
    cos = jnp.dot(xn, wn, precision=jax.lax.Precision.HIGHEST)
    one_hot = jax.nn.one_hot(y, C, dtype=jnp.float32)
    g = 2.0 * ((cos + 1.0) / 2.0) ** t - 1.0 - m * (2.0 * one_hot - 1.0)
    logits = r * g + b_const
    weight = lw * C / r * (alpha * one_hot + (1.0 - alpha) * (1.0 - one_hot))
    per = weight * (jnp.maximum(logits, 0.0) - logits * one_hot
                    + jnp.log1p(jnp.exp(-jnp.abs(logits))))
    return jnp.mean(per)


if __name__ == "__main__":
    # Small shapes consistent with the module: feat_dim=32.  num_class=900 with
    # tile_c=256 gives 4 class tiles -> 2 per core (exercises the parallel class
    # split, multi-step accumulation, multi-lane-group reduce and padded-column
    # masking 900->1024).  B=6 exercises batch padding (6->8) + row masking.
    B, feat_dim, num_class = 6, 32, 900
    alpha, r, m, t, lw = 0.7, 40.0, 0.4, 3.0, 50.0

    key = jax.random.PRNGKey(0)
    kx, kw, ky = jax.random.split(key, 3)

    x = jax.random.normal(kx, (B, feat_dim), dtype=jnp.float32)
    y = jax.random.randint(ky, (B,), 0, num_class, dtype=jnp.int32)

    # xavier_normal_ on w: std = sqrt(2 / (fan_in + fan_out))
    w_std = math.sqrt(2.0 / (feat_dim + num_class))
    w = w_std * jax.random.normal(kw, (feat_dim, num_class), dtype=jnp.float32)
    b_const = _compute_bias(num_class, alpha, r, m, t)

    loss = sphereface2_loss(x, w, y, alpha=alpha, r=r, m=m, t=t, lw=lw,
                            b_const=b_const, tile_c=256)
    loss = jax.block_until_ready(loss)

    ref = sphereface2_loss_ref(x, w, y, alpha=alpha, r=r, m=m, t=t, lw=lw,
                               b_const=b_const)
    ref = jax.block_until_ready(ref)

    assert jnp.isfinite(loss), "kernel produced non-finite loss"
    # Tolerance covers TPU matmul-precision differences between the in-kernel
    # MXU path and the full-f32 reference; real bugs are orders of magnitude off.
    assert abs(float(loss) - float(ref)) <= 2e-3 * max(1.0, abs(float(ref))), (
        f"mismatch: kernel={float(loss)} ref={float(ref)}")

    print("KERNEL_OK")
</pallas_src>

<mosaic_0001>
module attributes {stable_mosaic.version = 11 : i64} {
  func.func @kernel(%arg0: i32, %arg1: i32, %arg2: memref<8x32xf32, #tpu.memory_space<vmem>>, %arg3: memref<32x256xf32, #tpu.memory_space<vmem>>, %arg4: memref<8x1xi32, #tpu.memory_space<vmem>>, %arg5: memref<1x1x1xf32, #tpu.memory_space<vmem>>, %arg6: memref<8x32xf32, #tpu.memory_space<vmem>>, %arg7: memref<8x128xf32, #tpu.memory_space<vmem>>) attributes {dimension_semantics = [#tpu.dimension_semantics<parallel>, #tpu.dimension_semantics<arbitrary>], iteration_bounds = array<i64: 2, 2>, scalar_prefetch = 0 : i64, scratch_operands = 2 : i64, tpu.core_type = #tpu.core_type<tc>, window_params = [{pipeline_mode = #tpu.pipeline_mode<synchronous>, transform_indices = @transform_0, window_bounds = array<i64: 8, 32>}, {transform_indices = @transform_1, window_bounds = array<i64: 32, 256>}, {pipeline_mode = #tpu.pipeline_mode<synchronous>, transform_indices = @transform_2, window_bounds = array<i64: 8, 1>}, {transform_indices = @transform_3, window_bounds = array<i64: 1, 1, 1>}]} {
    %c0_i32 = arith.constant 0 : i32
    %0 = arith.cmpi eq, %arg1, %c0_i32 : i32
    %1 = arith.extui %0 : i1 to i32
    %c0_i32_0 = arith.constant 0 : i32
    %2 = arith.cmpi ne, %1, %c0_i32_0 : i32
    scf.if %2 {
      %cst_27 = arith.constant 0.000000e+00 : f32
      %70 = vector.broadcast %cst_27 : f32 to vector<8x128xf32>
      %c0_28 = arith.constant 0 : index
      %c0_29 = arith.constant 0 : index
      %71 = vector.load %arg7[%c0_28, %c0_29] : memref<8x128xf32, #tpu.memory_space<vmem>>, vector<8x128xf32>
      tpu.vector_store %arg7[%c0_28, %c0_29], %70 {strides = array<i32>} : memref<8x128xf32, #tpu.memory_space<vmem>>, vector<8x128xf32>,
      %c0_30 = arith.constant 0 : index
      %c0_31 = arith.constant 0 : index
      %72 = vector.load %arg2[%c0_30, %c0_31] : memref<8x32xf32, #tpu.memory_space<vmem>>, vector<8x32xf32>
      %73 = arith.mulf %72, %72 : vector<8x32xf32>
      %cst_32 = arith.constant dense<0.000000e+00> : vector<8xf32>
      %74 = vector.multi_reduction <add>, %73, %cst_32 [1] : vector<8x32xf32> to vector<8xf32>
      %75 = vector.shape_cast %74 : vector<8xf32> to vector<8x1xf32>
      %cst_33 = arith.constant 1.000000e-24 : f32
      %76 = vector.broadcast %cst_33 : f32 to vector<8x1xf32>
      %77 = arith.maximumf %75, %76 : vector<8x1xf32>
      %78 = math.rsqrt %77 : vector<8x1xf32>
      %79 = vector.broadcast %78 : vector<8x1xf32> to vector<8x32xf32>
      %80 = arith.mulf %72, %79 : vector<8x32xf32>
      %c0_34 = arith.constant 0 : index
      %c0_35 = arith.constant 0 : index
      %81 = vector.load %arg6[%c0_34, %c0_35] : memref<8x32xf32, #tpu.memory_space<vmem>>, vector<8x32xf32>
      tpu.vector_store %arg6[%c0_34, %c0_35], %80 {strides = array<i32>} : memref<8x32xf32, #tpu.memory_space<vmem>>, vector<8x32xf32>,
    } else {
    }
    %c0 = arith.constant 0 : index
    %c0_1 = arith.constant 0 : index
    %3 = vector.load %arg3[%c0, %c0_1] : memref<32x256xf32, #tpu.memory_space<vmem>>, vector<32x256xf32>
    %4 = arith.mulf %3, %3 : vector<32x256xf32>
    %cst = arith.constant dense<0.000000e+00> : vector<256xf32>
    %5 = vector.multi_reduction <add>, %4, %cst [0] : vector<32x256xf32> to vector<256xf32>
    %6 = vector.shape_cast %5 : vector<256xf32> to vector<1x256xf32>
    %cst_2 = arith.constant 1.000000e-24 : f32
    %7 = vector.broadcast %cst_2 : f32 to vector<1x256xf32>
    %8 = arith.maximumf %6, %7 : vector<1x256xf32>
    %9 = math.rsqrt %8 : vector<1x256xf32>
    %c0_3 = arith.constant 0 : index
    %c0_4 = arith.constant 0 : index
    %10 = vector.load %arg6[%c0_3, %c0_4] : memref<8x32xf32, #tpu.memory_space<vmem>>, vector<8x32xf32>
    %c0_5 = arith.constant 0 : index
    %c0_6 = arith.constant 0 : index
    %11 = vector.load %arg3[%c0_5, %c0_6] : memref<32x256xf32, #tpu.memory_space<vmem>>, vector<32x256xf32>
    %cst_7 = arith.constant dense<0.000000e+00> : vector<8x256xf32>
    %12 = tpu.matmul %10, %11, %cst_7 {dimension_numbers = #tpu.dot_dimension_numbers<[1], [0], [0], [1], [0, 0, 1, 1], [], []>} : vector<8x32xf32>, vector<32x256xf32>, vector<8x256xf32> -> vector<8x256xf32>
    %13 = vector.broadcast %9 : vector<1x256xf32> to vector<8x256xf32>
    %14 = arith.mulf %12, %13 : vector<8x256xf32>
    %c2_i32 = arith.constant 2 : i32
    %15 = arith.muli %arg0, %c2_i32 : i32
    %16 = arith.addi %15, %arg1 : i32
    %c256_i32 = arith.constant 256 : i32
    %17 = arith.muli %16, %c256_i32 : i32
    %18 = tpu.iota {dimensions = array<i32: 1>} : vector<8x256xi32>
    %19 = vector.broadcast %17 : i32 to vector<8x256xi32>
    %20 = arith.addi %19, %18 : vector<8x256xi32>
    %c0_8 = arith.constant 0 : index
    %c0_9 = arith.constant 0 : index
    %21 = vector.load %arg4[%c0_8, %c0_9] : memref<8x1xi32, #tpu.memory_space<vmem>>, vector<8x1xi32>
    %22 = vector.broadcast %21 : vector<8x1xi32> to vector<8x256xi32>
    %23 = arith.cmpi eq, %20, %22 : vector<8x256xi32>
    %cst_10 = arith.constant 5.000000e-01 : f32
    %24 = vector.broadcast %cst_10 : f32 to vector<8x256xf32>
    %25 = arith.mulf %14, %24 : vector<8x256xf32>
    %cst_11 = arith.constant 5.000000e-01 : f32
    %26 = vector.broadcast %cst_11 : f32 to vector<8x256xf32>
    %27 = arith.addf %25, %26 : vector<8x256xf32>
    %28 = arith.mulf %27, %27 : vector<8x256xf32>
    %29 = arith.mulf %27, %28 : vector<8x256xf32>
    %cst_12 = arith.constant 8.000000e+01 : f32
    %30 = vector.broadcast %cst_12 : f32 to vector<8x256xf32>
    %31 = arith.mulf %30, %29 : vector<8x256xf32>
    %cst_13 = arith.constant -15.9513865 : f32
    %32 = vector.broadcast %cst_13 : f32 to vector<8x256xf32>
    %33 = arith.addf %31, %32 : vector<8x256xf32>
    %cst_14 = arith.constant 3.200000e+01 : f32
    %34 = vector.broadcast %cst_14 : f32 to vector<8x256xf32>
    %35 = arith.subf %33, %34 : vector<8x256xf32>
    %36 = arith.select %23, %35, %33 : vector<8x256xi1>, vector<8x256xf32>
    %cst_15 = arith.constant 0.000000e+00 : f32
    %37 = vector.broadcast %cst_15 : f32 to vector<8x256xf32>
    %38 = arith.maximumf %36, %37 : vector<8x256xf32>
    %cst_16 = arith.constant 0.000000e+00 : f32
    %39 = vector.broadcast %cst_16 : f32 to vector<8x256xf32>
    %40 = arith.select %23, %36, %39 : vector<8x256xi1>, vector<8x256xf32>
    %41 = arith.subf %38, %40 : vector<8x256xf32>
    %42 = math.absf %36 : vector<8x256xf32>
    %cst_17 = arith.constant 0.000000e+00 : f32
    %43 = vector.broadcast %cst_17 : f32 to vector<8x256xf32>
    %44 = arith.subf %43, %42 : vector<8x256xf32>
    %45 = math.exp %44 : vector<8x256xf32>
    %46 = math.log1p %45 : vector<8x256xf32>
    %47 = arith.addf %41, %46 : vector<8x256xf32>
    %cst_18 = arith.constant 7.875000e+02 : f32
    %cst_19 = arith.constant 3.375000e+02 : f32
    %48 = vector.broadcast %cst_18 : f32 to vector<8x256xf32>
    %49 = vector.broadcast %cst_19 : f32 to vector<8x256xf32>
    %50 = arith.select %23, %48, %49 : vector<8x256xi1>, vector<8x256xf32>
    %51 = arith.mulf %50, %47 : vector<8x256xf32>
    %c900_i32 = arith.constant 900 : i32
    %52 = vector.broadcast %c900_i32 : i32 to vector<8x256xi32>
    %53 = arith.cmpi slt, %20, %52 : vector<8x256xi32>
    %cst_20 = arith.constant 0.000000e+00 : f32
    %54 = vector.broadcast %cst_20 : f32 to vector<8x256xf32>
    %55 = arith.select %53, %51, %54 : vector<8x256xi1>, vector<8x256xf32>
    %56 = vector.extract_strided_slice %55 {offsets = [0, 0], sizes = [8, 128], strides = [1, 1]} : vector<8x256xf32> to vector<8x128xf32>
    %57 = vector.extract_strided_slice %55 {offsets = [0, 128], sizes = [8, 128], strides = [1, 1]} : vector<8x256xf32> to vector<8x128xf32>
    %58 = arith.addf %56, %57 : vector<8x128xf32>
    %59 = tpu.iota {dimensions = array<i32: 0>} : vector<8x128xi32>
    %c6_i32 = arith.constant 6 : i32
    %60 = vector.broadcast %c6_i32 : i32 to vector<8x128xi32>
    %61 = arith.cmpi slt, %59, %60 : vector<8x128xi32>
    %cst_21 = arith.constant 0.000000e+00 : f32
    %62 = vector.broadcast %cst_21 : f32 to vector<8x128xf32>
    %63 = arith.select %61, %58, %62 : vector<8x128xi1>, vector<8x128xf32>
    %c0_22 = arith.constant 0 : index
    %c0_23 = arith.constant 0 : index
    %64 = vector.load %arg7[%c0_22, %c0_23] : memref<8x128xf32, #tpu.memory_space<vmem>>, vector<8x128xf32>
    %65 = arith.addf %64, %63 : vector<8x128xf32>
    %c0_24 = arith.constant 0 : index
    %c0_25 = arith.constant 0 : index
    %66 = vector.load %arg7[%c0_24, %c0_25] : memref<8x128xf32, #tpu.memory_space<vmem>>, vector<8x128xf32>
    tpu.vector_store %arg7[%c0_24, %c0_25], %65 {strides = array<i32>} : memref<8x128xf32, #tpu.memory_space<vmem>>, vector<8x128xf32>,
    %c1_i32 = arith.constant 1 : i32
    %67 = arith.cmpi eq, %arg1, %c1_i32 : i32
    %68 = arith.extui %67 : i1 to i32
    %c0_i32_26 = arith.constant 0 : i32
    %69 = arith.cmpi ne, %68, %c0_i32_26 : i32
    scf.if %69 {
      %c0_27 = arith.constant 0 : index
      %c0_28 = arith.constant 0 : index
      %70 = vector.load %arg7[%c0_27, %c0_28] : memref<8x128xf32, #tpu.memory_space<vmem>>, vector<8x128xf32>
      %71 = vector.shape_cast %70 : vector<8x128xf32> to vector<1x8x128xf32>
      %cst_29 = arith.constant dense<0.000000e+00> : vector<1xf32>
      %72 = vector.multi_reduction <add>, %71, %cst_29 [1, 2] : vector<1x8x128xf32> to vector<1xf32>
      %73 = vector.shape_cast %72 : vector<1xf32> to vector<1x1x1xf32>
      %74 = vector.extract %73[0, 0, 0] : f32 from vector<1x1x1xf32>
      %cst_30 = arith.constant 1.85185185E-4 : f32
      %75 = arith.mulf %74, %cst_30 : f32
      %76 = vector.broadcast %75 : f32 to vector<1x1x1xf32>
      %c0_31 = arith.constant 0 : index
      %c0_32 = arith.constant 0 : index
      %c0_33 = arith.constant 0 : index
      %77 = vector.load %arg5[%c0_31, %c0_32, %c0_33] : memref<1x1x1xf32, #tpu.memory_space<vmem>>, vector<1x1x1xf32>
      tpu.vector_store %arg5[%c0_31, %c0_32, %c0_33], %76 {strides = array<i32>} : memref<1x1x1xf32, #tpu.memory_space<vmem>>, vector<1x1x1xf32>,
    } else {
    }
    return
  }
  func.func @transform_0(%arg0: i32, %arg1: i32) -> (i32, i32) {
    %c0_i32 = arith.constant 0 : i32
    %c0_i32_0 = arith.constant 0 : i32
    %c0_i32_1 = arith.constant 0 : i32
    return %c0_i32, %c0_i32_0 : i32, i32
  }
  func.func @transform_1(%arg0: i32, %arg1: i32) -> (i32, i32) {
    %c2_i32 = arith.constant 2 : i32
    %0 = arith.muli %arg0, %c2_i32 : i32
    %1 = arith.addi %0, %arg1 : i32
    %c0_i32 = arith.constant 0 : i32
    %c0_i32_0 = arith.constant 0 : i32
    return %c0_i32, %1 : i32, i32
  }
  func.func @transform_2(%arg0: i32, %arg1: i32) -> (i32, i32) {
    %c0_i32 = arith.constant 0 : i32
    %c0_i32_0 = arith.constant 0 : i32
    %c0_i32_1 = arith.constant 0 : i32
    return %c0_i32, %c0_i32_0 : i32, i32
  }
  func.func @transform_3(%arg0: i32, %arg1: i32) -> (i32, i32, i32) {
    %c0_i32 = arith.constant 0 : i32
    %c0_i32_0 = arith.constant 0 : i32
    %c0_i32_1 = arith.constant 0 : i32
    return %arg0, %c0_i32, %c0_i32_0 : i32, i32, i32
  }
}

</mosaic_0001>

<bundles_post_ra>
// kernel: tpu_custom_call.1
= control target key start
LH: loop header
LB: loop body
LE: loop exit
PB: predicated region body
PF: predicated region fallthrough
CT: control target
= control target key end

     0   :  { %8 = vsyncpa [#allocation5], 0  ;;  %s944_s0 = inlined_call_operand.vmem [shape: f32[8,32], index: 0, kind: input, shape index: {}]   ;;  %s945_s1 = inlined_call_operand.hbm [shape: f32[32,1024], index: 1, kind: input, shape index: {}]   ;;  %s946_s2 = inlined_call_operand.vmem [shape: s32[8,1], index: 2, kind: input, shape index: {}]   ;;  %s947_s3 = inlined_call_operand.vmem [shape: f32[2,1,1], index: 3, kind: output, shape index: {}]  }
   0x1   :  { %10 = vsyncpa [#allocation5 + $0x1], 0  ;;  %s761_s12 = smov 0   ;;  %s763_s13 = smov 0  }
   0x2   :  { %s765_s14 = smov 0   ;;  %s767_s15 = smov 0  }
   0x3   :  { %s769_s16 = smov 0   ;;  %s771_s17 = smov 0  }
   0x4   :  { %s773_s18 = smov 0   ;;  %s775_s19 = smov 0  }
   0x5 LB: > { %s510_s20 = sadd.s32 4294967295, %s731_s19   ;;  %s25_s21 = sadd.s32 1, %s723_s17  ;;  %s731_s19 = sphi %s775_s19, %s16_s19   ;;  %s727_s18 = sphi %s773_s18, %s958_s18   ;;  %s723_s17 = sphi %s771_s17, %s957_s17   ;;  %s719_s16 = sphi %s769_s16, %s956_s16   ;;  %s715_s15 = sphi %s767_s15, %s955_s15   ;;  %s711_s14 = sphi %s765_s14, %s954_s14   ;;  %s707_s13 = sphi %s763_s13, %s953_s13   ;;  %s703_s12 = sphi %s761_s12, %s952_s12  }
   0x6   : > { %p26_p0 = scmp.ge.s32.totalorder %s25_s21, 2  ;;  %s28_s22 = sadd.s32 1, %s727_s18 }
   0x7   : > { %s512_s23 = sshll.u32 %s727_s18, 1  ;;  %s60_s24 = sadd.s32 1, %s711_s14 }
   0x8   : > { %s960_s21 = smov (%p26_p0, %s25_s21), 0  ;;  %s962_s22 = smov (!%p26_p0, %s28_s22), %s727_s18 }
   0x9   : > { %s54_s25 = sadd.s32 %s723_s17, %s512_s23  ;;  %p67_p1 = scmp.ne.s32.totalorder %s711_s14, %s707_s13 }
   0xa   : > { %p30_p2 = scmp.ge.s32.totalorder %s962_s22, 2  ;;  %p68_p3 = scmp.eq.s32.totalorder %s731_s19, 0 }
   0xb   : > { %p73_p4 = scmp.ne.s32.totalorder %s707_s13, %s703_s12  ;;  %p74_p5 = scmp.eq.s32.totalorder %s510_s20, 0 }
   0xc   : > { %s964_s22 = smov (%p30_p2, %s962_s22), 0  ;;  %p814_p6 = por %p68_p3, %p67_p1 }
   0xd   : > { %p818_p7 = por %p74_p5, %p73_p4  ;;  %s513_s28 = sshll.u32 %s964_s22, 1 }
   0xe   : > { %s56_s29 = sadd.s32 %s513_s28, %s960_s21  ;;  %p548_p8 = scmp.lt.s32.totalorder %s731_s19, 4 }
   0xf   : > { %s57_s30 = ssub.s32 %s54_s25, %s56_s29  ;;  %s150_s4 = sand.u32 1, %s711_s14  }
  0x10   : > { %p58_p9 = scmp.eq.s32.totalorder %s57_s30, 0  ;;  %s516_s5 = sshll.u32 %s150_s4, 6 }
  0x11   : > { %s531_s6 = sshll.u32 %s54_s25, 8  ;;  %s154_s11 = scalar_lea.vmem [#allocation4], %s516_s5 }
  0x12   : > { %s827_s7 = scalar_select %p58_p9, %s711_s14, %s60_s24  }
  0x13   : > { %s832_s10 = scalar_lea.hbm %s945_s1, %s531_s6  ;;  %s163_s12 = sshll.u32 %s154_s11, 4  ;;  %s840_s12 = int_to_ptr.vmem [resolvable:$true] %s163_s12 }
  0x14   : > { %p836_p10 = pnand %p548_p8, %p814_p6  ;;  %s843_s23 = scalar_lea.sflag [#allocation5], %s150_s4 }
  0x15   : > { %s635_s24 = scalar_lea.hbm %s832_s10, 1024  ;;  %s640_s28 = scalar_lea.hbm %s945_s1, 4096 }
  0x16   : > { %p636_p12 = scmp.ne.s32.totalorder %s832_s10, %s635_s24  ;;  %p637_p13 = pneg %p836_p10 }
  0x17   : > { %p641_p2 = scmp.lt.u32.totalorder %s832_s10, %s945_s1  ;;  %p642_p3 = scmp.lt.u32.totalorder %s640_s28, %s635_s24 }
  0x18   : > { %p638_p0 = pnand %p637_p13, %p636_p12  ;;  %p644_p5 = scmp.lt.u32.totalorder %s635_s24, %s832_s10 }
  0x19   : > { %p643_p4 = por %p642_p3, %p641_p2 }
  0x1a   : > { %p639_p1 = pneg %p638_p0 }
  0x1b   : > { %p645_p6 = por %p644_p5, %p643_p4 }
  0x1d   : > { %p646_p8 = pnand %p645_p6, %p639_p1 }
  0x1f   : > { %649 = shalt.err (!%p646_p8)
}
  0x20   : > { %s650_s4 = scalar_lea.vmem %s840_s12, 1024  ;;  %s733_s5 = smov [#allocation4]  }
  0x21   : > { %p651_p9 = scmp.ne.s32.totalorder %s840_s12, %s650_s4  ;;  %s655_s6 = sshll.u32 %s733_s5, 4  ;;  %s656_s6 = int_to_ptr.vmem [resolvable:$false] %s655_s6 }
  0x22   : > { %s657_s8 = scalar_lea.vmem %s656_s6, 2048  ;;  %p658_p11 = scmp.lt.s32.totalorder %s840_s12, %s656_s6 }
  0x23   : > { %p653_p12 = pnand %p651_p9, %p637_p13  ;;  %p659_p2 = scmp.lt.s32.totalorder %s657_s8, %s650_s4 }
  0x25   : > { %p654_p0 = pneg %p653_p12  ;;  %p660_p3 = por %p659_p2, %p658_p11 }
  0x27   : > { %p661_p4 = pnand %p660_p3, %p654_p0 }
  0x29   : > { %664 = shalt.err (!%p661_p4)
}
  0x2a   : > { %s734_s9 = smov 1024   ;;  %s735_s11 = smov 256  }
  0x2b   : > { %s736_s24 = smov 16   ;;  %p171_p13 = scmp.lt.s32.totalorder %s731_s19, 5 }
  0x2c   : > { %547 = dma.hbm_to_vmem [thread:$0]  (!%p836_p10), %s832_s10, 1024, %s840_s12, %s843_s23, %s734_s9, %s735_s11, %s736_s24  }
  0x2d   : > { %p951_p1 = scmp.ge.s32.totalorder %s731_s19, 1 }
  0x2f   : > { %p172_p5 = pnand %p951_p1, %p171_p13 }
  0x30   : > { %s177_s25 = sand.u32 (!%p172_p5), 1, %s707_s13  }
  0x31   : > { %175 = sbr.rel (%p172_p5) target bundleno = 721 (0x2d1), region = 32  ;;  %s521_s26 = sshll.u32 (!%p172_p5), %s177_s25, 6 }
  0x32   : > { %s178_s28 = scalar_lea.sflag (!%p172_p5), [#allocation5], %s177_s25  ;;  %s875_s29 = scalar_lea.vmem (!%p172_p5), [#allocation4], %s521_s26 }
  0x38   : > { %698 = dma.done.wait (%p818_p7), %s178_s28, 1024  }
  0x39   : > { %700 = vsyncadd (%p818_p7), %s178_s28, 4294966272  ;;  %p205_p11 = scmp.lt.s32.totalorder %s719_s16, 1  ;;  %p522_p10 = scmp.ne.s32.totalorder %s715_s15, 0 }
  0x3a   : > { %v213_v0 = vld [vmem:[%s944_s0] sm:$0xff] (!%p522_p10)  ;;  %vm215_vm0 = vcmask (!%p522_p10), 261120   ;;  %v737_v1 = vmov (!%p522_p10), 0.0  }
  0x3b   : > { %s883_s10 = scalar_select %p205_p11, %s719_s16, 1 }
  0x3c   : > { %211 = sbr.rel (%p522_p10) target bundleno = 221 (0xdd), region = 40  ;;  %212 = vst [vmem:[#allocation3] sm:$0xff] (!%p522_p10), %v737_v1  ;;  %v214_v2 = vmul.f32 (!%p522_p10), %v213_v0, %v213_v0 }
  0x3d   : > { %s207_s23 = scalar_lea.vmem %s947_s3, %s883_s10 }
  0x3e   : > { %v216_v3 = vsel (!%p522_p10), %vm215_vm0, %v214_v2, 0.0 }
  0x3f   : > { %217 = vadd.xlane.f32.xlu0 (!%p522_p10), %v216_v3 }
  0xcc   : > { %v218_v4 = vpop.xlane.xlu0 %217 }
  0xcd   : > { %v219_v5 = vmax.f32 %v218_v4, 1e-24 }
  0xcf   : > { %620 = vrsqrt.f32 %v219_v5 }
  0xd9   : > { %v621_v6 = vpop.eup %620 }
  0xda   : > { %v221_v7 = vmul.f32 %v621_v6, %v213_v0 }
  0xdc   : > { %222 = vst.msk [vmem:[#allocation2] sm:$0xff] %vm215_vm0, %v221_v7 }
  0xdd PF: > { %v224_v8 = vld [vmem:[%s875_s29 + $0x8] sm:$0xff]  ;;  %v226_v9 = vld [vmem:[%s875_s29 + $0x18] sm:$0xff]  ;;  %v223_v10 = vld [vmem:[%s875_s29] sm:$0xff]  ;;  %v738_v18 = vmov 0.0   ;;  %v739_v24 = vmov 0   ;;  %vm262_vm1 = vcmask 261120   ;;  %v342_v54 = vlaneseq }
  0xde   : > { %v232_v11 = vmul.f32 %v224_v8, %v224_v8  ;;  %v234_v12 = vmul.f32 %v226_v9, %v226_v9  ;;  %v532_v13 = vpack.c.bf16 %v226_v9, %v224_v8  ;;  %v225_v14 = vld [vmem:[%s875_s29 + $0x10] sm:$0xff]  ;;  %v231_v15 = vmul.f32 %v223_v10, %v223_v10  ;;  %v228_v16 = vld [vmem:[%s875_s29 + $0x28] sm:$0xff]  ;;  %v230_v17 = vld [vmem:[%s875_s29 + $0x38] sm:$0xff]  ;;  %330 = vmatprep.mubr.f32.mxu0 %v738_v18  ;;  %s524_s6 = sshll.u32 %s719_s16, 1  ;;  %p528_p7 = scmp.ne.s32.totalorder %s715_s15, 1 }
  0xdf   : > { %v233_v19 = vmul.f32 %v225_v14, %v225_v14  ;;  %v534_v20 = vpack.c.bf16 %v225_v14, %v223_v10  ;;  %v236_v21 = vmul.f32 %v228_v16, %v228_v16  ;;  %v227_v22 = vld [vmem:[%s875_s29 + $0x20] sm:$0xff]  ;;  %v229_v23 = vld [vmem:[%s875_s29 + $0x30] sm:$0xff]  ;;  %622 = vset.pattern.permute.xlu0 %v739_v24  ;;  %v238_v26 = vmul.f32 %v230_v17, %v230_v17  ;;  %s340_s8 = sadd.s32 %s715_s15, %s524_s6 }
  0xe0   : > { %v248_v25 = vadd.f32 %v234_v12, %v232_v11  ;;  %533 = vmatprep.subr.bf16.mxu0 %v532_v13  ;;  %v536_v27 = vpack.c.bf16 %v230_v17, %v228_v16  ;;  %v235_v28 = vmul.f32 %v227_v22, %v227_v22  ;;  %v348_v29 = vld [vmem:[%s946_s2] sm:$0xff]  ;;  %v237_v31 = vmul.f32 %v229_v23, %v229_v23  ;;  %s525_s9 = sshll.u32 %s340_s8, 8 }
  0xe1   : > { %v239_v30 = vadd.f32 %v233_v19, %v231_v15  ;;  %535 = vmatpush1.bf16.msra.mxu0 %v534_v20  ;;  %v538_v32 = vpack.c.bf16 %v229_v23, %v227_v22  ;;  %350 = vperm.xlu0 %622, %v348_v29   ;;  %v343_v60 = vand.u32 127, %v342_v54  ;;  %v345_v2 = vstv %s525_s9 }
  0xe2   : > { %v249_v33 = vadd.f32 %v248_v25, %v236_v21  ;;  %537 = vmatprep.subr.bf16.mxu0 %v536_v27  ;;  %vm436_vm9 = vcmask (!%p528_p7), 0  }
  0xe3   : > { %v240_v34 = vadd.f32 %v239_v30, %v235_v28  ;;  %v261_v37 = vld [vmem:[#allocation2] sm:$0xff]  ;;  %v344_v1 = vadd.s32 128, %v343_v60  ;;  %v346_v6 = vadd.s32 %v345_v2, %v343_v60 }
  0xe4   : > { %v250_v35 = vadd.f32 %v249_v33, %v238_v26 }
  0xe5   : > { %v241_v36 = vadd.f32 %v240_v34, %v237_v31  ;;  %539 = vmatpush1.bf16.msra.mxu0 %v538_v32  ;;  %v347_v9 = vadd.s32 %v345_v2, %v344_v1  ;;  %vm408_vm6 = vcmp.lt.s32.totalorder %v346_v6, 900 }
  0xe6   : > { %v251_v39 = vrot.slane %v250_v35, 4 }
  0xe7   : > { %v242_v38 = vrot.slane %v241_v36, 4  ;;  %vm409_vm7 = vcmp.lt.s32.totalorder %v347_v9, 900 }
  0xe8   : > { %523 = vmatmul.mubr.msk.f32.vlgmr.msra.gmra.mrb[0].mxu0 %vm262_vm1, %v261_v37  ;;  %v252_v41 = vadd.f32 %v251_v39, %v250_v35 }
  0xe9   : > { %v243_v40 = vadd.f32 %v242_v38, %v241_v36 }
  0xea   : > { %v253_v43 = vrot.slane %v252_v41, 2 }
  0xeb   : > { %v244_v42 = vrot.slane %v243_v40, 2 }
  0xec   : > { %v254_v45 = vadd.f32 %v253_v43, %v252_v41 }
  0xed   : > { %v245_v44 = vadd.f32 %v244_v42, %v243_v40 }
  0xee   : > { %v255_v47 = vrot.slane %v254_v45, 1 }
  0xef   : > { %v246_v46 = vrot.slane %v245_v44, 1 }
  0xf0   : > { %v256_v49 = vadd.f32 %v255_v47, %v254_v45 }
  0xf1   : > { %v247_v48 = vadd.f32 %v246_v46, %v245_v44 }
  0xf2   : > { %v258_v51 = vmax.f32 %v256_v49, 1e-24  ;;  %v740_v49 = vmov 337.5  }
  0xf3   : > { %v257_v50 = vmax.f32 %v247_v48, 1e-24 }
  0xf5   : > { %623 = vrsqrt.f32 %v257_v50 }
  0xf6   : > { %625 = vrsqrt.f32 %v258_v51  ;;  %v414_v51 = vshrl.u32 %v342_v54, 7 }
  0xf8   : > { %vm415_vm8 = vcmp.lt.s32.totalorder %v414_v51, 6 }
  0xff   : > { %v624_v52 = vpop.eup %623 }
 0x100   : > { %v626_v53 = vpop.eup %625 }
 0x160   : > { %v351_v8 = vpop.permute.xlu0 %350 }
 0x161   : > { %vm352_vm2 = vcmp.eq.s32.totalorder %v346_v6, %v351_v8  ;;  %vm353_vm3 = vcmp.eq.s32.totalorder %v347_v9, %v351_v8 }
 0x162   : > { %v404_v50 = vsel %vm352_vm2, 787.5, %v740_v49 }
 0x1bb   : > { %v332_v55 = vpop.f32.mrb[0].mxu0 }
 0x1bc   : > { %v337_v56 = vmul.f32 %v624_v52, %v332_v55  ;;  %v334_v57 = vpop.f32.mrb[1].mxu0  ;;  %v405_v52 = vsel %vm353_vm3, 787.5, %v740_v49 }
 0x1bd   : > { %v338_v58 = vmul.f32 %v626_v53, %v334_v57 }
 0x1be   : > { %v354_v59 = vmul.f32 0.5, %v337_v56 }
 0x1bf   : > { %v355_v61 = vmul.f32 0.5, %v338_v58  ;;  %v417_v58 = vld [vmem:[#allocation3] sm:$0xff] }
 0x1c0   : > { %v356_v62 = vadd.f32 0.5, %v354_v59 }
 0x1c1   : > { %v357_v63 = vadd.f32 0.5, %v355_v61 }
 0x1c2   : > { %v358_v0 = vmul.f32 %v356_v62, %v356_v62 }
 0x1c3   : > { %v359_v3 = vmul.f32 %v357_v63, %v357_v63 }
 0x1c4   : > { %v360_v4 = vmul.f32 %v358_v0, %v356_v62 }
 0x1c5   : > { %v361_v5 = vmul.f32 %v359_v3, %v357_v63 }
 0x1c6   : > { %v362_v7 = vmul.f32 80.0, %v360_v4 }
 0x1c7   : > { %v363_v10 = vmul.f32 80.0, %v361_v5 }
 0x1c8   : > { %v364_v11 = vadd.f32 -15.951386, %v362_v7 }
 0x1c9   : > { %v365_v12 = vadd.f32 -15.951386, %v363_v10 }
 0x1ca   : > { %v526_v13 = vadd.f32 -32.0, %v364_v11 }
 0x1cb   : > { %v527_v14 = vadd.f32 -32.0, %v365_v12 }
 0x1cc   : > { %v368_v15 = vsel %vm352_vm2, %v526_v13, %v364_v11  ;;  %v372_v37 = vsel %vm352_vm2, %v526_v13, 0.0 }
 0x1cd   : > { %v369_v16 = vsel %vm353_vm3, %v527_v14, %v365_v12  ;;  %v376_v17 = vand.u32 2147483647, %v368_v15  ;;  %v370_v30 = vmax.f32 %v368_v15, 0.0  ;;  %v373_v38 = vsel %vm353_vm3, %v527_v14, 0.0 }
 0x1ce   : > { %v377_v18 = vand.u32 2147483647, %v369_v16  ;;  %v371_v33 = vmax.f32 %v369_v16, 0.0 }
 0x1cf   : > { %v378_v19 = vsub.f32 0.0, %v376_v17  ;;  %v374_v41 = vsub.f32 %v370_v30, %v372_v37 }
 0x1d0   : > { %v379_v20 = vsub.f32 0.0, %v377_v18  ;;  %v375_v44 = vsub.f32 %v371_v33, %v373_v38 }
 0x1d1   : > { %v380_v21 = vmul.f32 1.442695, %v378_v19 }
 0x1d2   : > { %v382_v22 = vmul.f32 1.442695, %v379_v20 }
 0x1d3   : > { %627 = vpow2.f32 %v380_v21 }
 0x1d4   : > { %629 = vpow2.f32 %v382_v22 }
 0x1dd   : > { %v628_v23 = vpop.eup %627 }
 0x1de   : > { %v630_v24 = vpop.eup %629  ;;  %v384_v25 = vadd.f32 1.0, %v628_v23  ;;  %v387_v27 = vmul.f32 -0.5, %v628_v23  ;;  %v390_v31 = vand.u32 2147483647, %v628_v23 }
 0x1df   : > { %v393_v26 = vadd.f32 1.0, %v630_v24  ;;  %v396_v28 = vmul.f32 -0.5, %v630_v24  ;;  %v399_v34 = vand.u32 2147483647, %v630_v24 }
 0x1e0   : > { %631 = vlog2.f32 %v384_v25  ;;  %v388_v29 = vadd.f32 1.0, %v387_v27  ;;  %vm391_vm4 = vcmp.lt.f32.partialorder %v390_v31, 0.0004427343 }
 0x1e1   : > { %633 = vlog2.f32 %v393_v26  ;;  %v397_v32 = vadd.f32 1.0, %v396_v28  ;;  %vm400_vm5 = vcmp.lt.f32.partialorder %v399_v34, 0.0004427343 }
 0x1e2   : > { %v389_v40 = vmul.f32 %v628_v23, %v388_v29 }
 0x1e3   : > { %v398_v43 = vmul.f32 %v630_v24, %v397_v32 }
 0x1ea   : > { %v632_v35 = vpop.eup %631 }
 0x1eb   : > { %v634_v36 = vpop.eup %633  ;;  %v386_v39 = vmul.f32 0.6931472, %v632_v35 }
 0x1ec   : > { %v395_v42 = vmul.f32 0.6931472, %v634_v36 }
 0x1ed   : > { %v392_v45 = vsel %vm391_vm4, %v389_v40, %v386_v39 }
 0x1ee   : > { %v401_v46 = vsel %vm400_vm5, %v398_v43, %v395_v42  ;;  %v402_v47 = vadd.f32 %v392_v45, %v374_v41 }
 0x1ef   : > { %v403_v48 = vadd.f32 %v401_v46, %v375_v44 }
 0x1f0   : > { %v406_v53 = vmul.f32 %v404_v50, %v402_v47 }
 0x1f1   : > { %v407_v55 = vmul.f32 %v405_v52, %v403_v48 }
 0x1f2   : > { %v410_v56 = vsel %vm408_vm6, %v406_v53, 0.0 }
 0x1f3   : > { %v411_v57 = vsel %vm409_vm7, %v407_v55, 0.0  ;;  %423 = sbr.rel (%p528_p7) target bundleno = 721 (0x2d1), region = 44 }
 0x1f4   : > { %v412_v59 = vadd.f32 %v411_v57, %v410_v56 }
 0x1f6   : > { %v416_v60 = vsel %vm415_vm8, %v412_v59, 0.0 }
 0x1f7   : > { %v418_v61 = vadd.f32 %v417_v58, %v416_v60 }
 0x1f9   : > { %419 = vst [vmem:[#allocation3] sm:$0xff] %v418_v61 }
 0x200   : > { %v424_v62 = vld [vmem:[#allocation3] sm:$0xff] }
 0x201   : > { %425 = vadd.xlane.f32.xlu0 %v424_v62 }
 0x28e   : > { %v426_v54 = vpop.xlane.xlu0 %425 }
 0x28f   : > { %v427_v63 = vrot.slane %v426_v54, 4 }
 0x291   : > { %v428_v0 = vadd.f32 %v427_v63, %v426_v54 }
 0x293   : > { %v429_v1 = vrot.slane %v428_v0, 2 }
 0x295   : > { %v430_v2 = vadd.f32 %v429_v1, %v428_v0 }
 0x297   : > { %v431_v3 = vrot.slane %v430_v2, 1 }
 0x299   : > { %v432_v4 = vadd.f32 %v431_v3, %v430_v2 }
 0x29b   : > { %540 = vpush %v432_v4 }
 0x2cc   : > { %s541_s16 = spop %540 }
 0x2cd   : > { %s434_s11 = smul.f32 0.00018518518, %s541_s16 }
 0x2cf   : > { %v435_v5 = vstv %s434_s11 }
 0x2d0   : > { %437 = vst.msk [vmem:[%s207_s23] sm:$0x1] %vm436_vm9, %v435_v5 }
 0x2d1 PF: > { %s16_s19 = sadd.s32 1, %s731_s19   ;;  %s952_s12 = smov %s707_s13 }
 0x2d2   : > { %p13_p6 = scmp.ge.s32.totalorder %s16_s19, 6   ;;  %s953_s13 = smov %s711_s14 }
 0x2d3   : > { %s954_s14 = smov %s827_s7  ;;  %s955_s15 = smov %s723_s17 }
 0x2d4   : > { %s956_s16 = smov %s727_s18  ;;  %s957_s17 = smov %s960_s21 }
 0x2d5   : > { %s958_s18 = smov %s964_s22  ;;  %15 = sbr.rel (!%p13_p6) target bundleno = 5 (0x5), region = 80 }
 0x2dc   :  { %455 = vsyncpa [#allocation5], 1 }
 0x2dd   :  { %457 = vsyncpa [#allocation5 + $0x1], 1 }

</bundles_post_ra>
